<compile_context>
chip_gen: v6e
topology: v6e:2x2x1
jax: 0.10.0
libtpu: 0.0.40
codegen_flags: <defaults>
</compile_context>

<pallas_src>
import functools

import jax
import jax.numpy as jnp
from jax.experimental import pallas as pl
from jax.experimental.pallas import tpu as pltpu


def _log_sigmoid(x):
    # Numerically stable log(sigmoid(x)).
    return jnp.minimum(x, 0.0) - jnp.log1p(jnp.exp(-jnp.abs(x)))


def _nsl_kernel(in_ref, outv_ref, noise_ref, seg_ref, part_ref, *, num_noise):
    """One batch tile: writes its partial loss-sum (broadcast over 128 lanes)."""
    iv = in_ref[...].astype(jnp.float32)      # (tb, E)
    ov = outv_ref[...].astype(jnp.float32)    # (tb, E)
    nv = noise_ref[...].astype(jnp.float32)   # (tb, N*E), lane-dense
    seg = seg_ref[...]                        # (N, N*E), 0/1 segment-sum matrix

    # Positive-sample term: log(sigmoid(<output_b, input_b>)).
    dot_out = jnp.sum(ov * iv, axis=-1, keepdims=True)        # (tb, 1)
    out_loss = _log_sigmoid(dot_out)                          # (tb, 1)

    # Noise terms: replicate the input along lanes, multiply elementwise against
    # the flat noise block, then segment-sum each E-chunk on the MXU.
    iv_rep = jnp.concatenate([iv] * num_noise, axis=-1)       # (tb, N*E)
    prod = nv * iv_rep                                        # (tb, N*E)  (VPU)
    noise_dot = jax.lax.dot_general(                          # (tb, N)    (MXU)
        prod, seg, (((1,), (1,)), ((), ())),
        preferred_element_type=jnp.float32)
    noise_loss = jnp.sum(_log_sigmoid(-noise_dot), axis=-1, keepdims=True)  # (tb,1)

    partial = jnp.sum(out_loss + noise_loss)                  # per-tile scalar
    part_ref[...] = jnp.broadcast_to(partial, part_ref.shape).astype(jnp.float32)


def _sublane_multiple(itemsize):
    return {1: 32, 2: 16, 4: 8}.get(itemsize, 8)


def _pick_batch_tile(batch, noise_row_bytes, itemsize,
                     target_bytes=4 << 20, max_rows=8192):
    """Largest batch tile (divisor of B, sublane-aligned) with ~target_bytes of noise."""
    sub = _sublane_multiple(itemsize)
    target_rows = max(sub, min(max_rows, target_bytes // max(noise_row_bytes, 1)))
    if batch <= target_rows:
        return batch
    best = batch  # fallback: full batch (full-extent block is always legal)
    d = sub
    while d <= target_rows:
        if batch % d == 0:
            best = d
        d += sub
    return best


def _vmem_limit_bytes(tb, n_noise, embed, itemsize):
    def padded(rows, cols, b):
        return (-(-rows // 8) * 8) * (-(-cols // 128) * 128) * b

    noise_blk = padded(tb, n_noise * embed, itemsize)
    in_blk = padded(tb, embed, itemsize)
    seg_blk = padded(n_noise, n_noise * embed, 4)
    out_blk = 8 * 128 * 4
    est = 2 * (noise_blk + 2 * in_blk + out_blk) + seg_blk  # double-buffered streams
    # Generous headroom for compute temporaries, but stay well under v7x's 64 MiB.
    return int(min(max(3 * est, 16 << 20), 48 << 20))


def negative_sampling_loss(input_vectors, output_vectors, noise_vectors, *,
                           batch_tile=None):
    B, E = input_vectors.shape
    Bn, N, En = noise_vectors.shape
    assert Bn == B and En == E, "shape mismatch between inputs and noise"

    itemsize = jnp.dtype(noise_vectors.dtype).itemsize
    sub = _sublane_multiple(itemsize)
    if batch_tile is None:
        tb = _pick_batch_tile(B, N * E * itemsize, itemsize)
    else:
        tb = batch_tile
    assert B % tb == 0, "batch must be divisible by the batch tile"
    assert tb == B or tb % sub == 0, \
        "batch_tile must be the full batch or a multiple of the sublane packing"
    num_tiles = B // tb

    # Free (contiguous) reshape in the wrapper -> lane-dense HBM stream for the DMA.
    noise_flat = jnp.reshape(noise_vectors, (B, N * E))

    # 0/1 segment-sum matrix: seg[n, k] = 1 iff k // E == n.
    seg = (jnp.arange(N, dtype=jnp.int32)[:, None]
           == (jnp.arange(N * E, dtype=jnp.int32) // E)[None, :]).astype(jnp.float32)

    kernel = functools.partial(_nsl_kernel, num_noise=N)

    partials = pl.pallas_call(
        kernel,
        out_shape=jax.ShapeDtypeStruct((num_tiles, 1, 128), jnp.float32),
        grid_spec=pltpu.PrefetchScalarGridSpec(
            num_scalar_prefetch=0,
            grid=(num_tiles,),
            in_specs=[
                pl.BlockSpec((tb, E), lambda i: (i, 0)),
                pl.BlockSpec((tb, E), lambda i: (i, 0)),
                pl.BlockSpec((tb, N * E), lambda i: (i, 0)),     # lane-dense noise
                pl.BlockSpec((N, N * E), lambda i: (0, 0)),      # resident constant
            ],
            out_specs=pl.BlockSpec((1, 1, 128), lambda i: (i, 0, 0)),
        ),
        compiler_params=pltpu.CompilerParams(
            dimension_semantics=("parallel",),  # tiles are independent (v7x 2-TC)
            vmem_limit_bytes=_vmem_limit_bytes(tb, N, E, itemsize),
        ),
    )(input_vectors, output_vectors, noise_flat, seg)

    # Final tiny reduction over per-tile partial sums in the wrapper.
    return -jnp.sum(partials[:, 0, 0]) / jnp.float32(B)


def negative_sampling_loss_ref(input_vectors, output_vectors, noise_vectors):
    """Pure-JAX reference matching the PyTorch forward exactly."""
    dot_out = jnp.sum(output_vectors * input_vectors, axis=-1)               # (B,)
    out_loss = jnp.log(jax.nn.sigmoid(dot_out))                              # (B,)
    noise_dot = jnp.einsum("bne,be->bn", -noise_vectors, input_vectors)      # (B, N)
    noise_loss = jnp.sum(jnp.log(jax.nn.sigmoid(noise_dot)), axis=1)         # (B,)
    return -jnp.mean(out_loss + noise_loss)


if __name__ == "__main__":
    B, N, E = 16, 4, 32
    key = jax.random.PRNGKey(0)
    k1, k2, k3 = jax.random.split(key, 3)
    input_vectors = jax.random.normal(k1, (B, E), dtype=jnp.float32) * 0.5
    output_vectors = jax.random.normal(k2, (B, E), dtype=jnp.float32) * 0.5
    noise_vectors = jax.random.normal(k3, (B, N, E), dtype=jnp.float32) * 0.5

    ref = negative_sampling_loss_ref(input_vectors, output_vectors, noise_vectors)

    # Auto-sized tile (single tile at this small batch).
    loss_auto = jax.block_until_ready(
        negative_sampling_loss(input_vectors, output_vectors, noise_vectors))
    assert jnp.allclose(loss_auto, ref, rtol=1e-5, atol=1e-5), (loss_auto, ref)

    # Explicit multi-tile path (exercises the parallel grid + partial-sum output).
    loss_tiled = jax.block_until_ready(
        negative_sampling_loss(input_vectors, output_vectors, noise_vectors,
                               batch_tile=8))
    assert jnp.allclose(loss_tiled, ref, rtol=1e-5, atol=1e-5), (loss_tiled, ref)

    print("KERNEL_OK")
</pallas_src>

<mosaic_0001>
module attributes {stable_mosaic.version = 11 : i64} {
  func.func @_nsl_kernel(%arg0: i32, %arg1: memref<16x32xf32, #tpu.memory_space<vmem>>, %arg2: memref<16x32xf32, #tpu.memory_space<vmem>>, %arg3: memref<16x128xf32, #tpu.memory_space<vmem>>, %arg4: memref<4x128xf32, #tpu.memory_space<vmem>>, %arg5: memref<1x1x128xf32, #tpu.memory_space<vmem>>) attributes {dimension_semantics = [#tpu.dimension_semantics<parallel>], iteration_bounds = array<i64: 1>, scalar_prefetch = 0 : i64, scratch_operands = 0 : i64, tpu.core_type = #tpu.core_type<tc>, window_params = [{transform_indices = @transform_0, window_bounds = array<i64: 16, 32>}, {transform_indices = @transform_1, window_bounds = array<i64: 16, 32>}, {transform_indices = @transform_2, window_bounds = array<i64: 16, 128>}, {pipeline_mode = #tpu.pipeline_mode<synchronous>, transform_indices = @transform_3, window_bounds = array<i64: 4, 128>}, {transform_indices = @transform_4, window_bounds = array<i64: 1, 1, 128>}]} {
    %c0 = arith.constant 0 : index
    %c0_0 = arith.constant 0 : index
    %0 = vector.load %arg1[%c0, %c0_0] : memref<16x32xf32, #tpu.memory_space<vmem>>, vector<16x32xf32>
    %c0_1 = arith.constant 0 : index
    %c0_2 = arith.constant 0 : index
    %1 = vector.load %arg2[%c0_1, %c0_2] : memref<16x32xf32, #tpu.memory_space<vmem>>, vector<16x32xf32>
    %c0_3 = arith.constant 0 : index
    %c0_4 = arith.constant 0 : index
    %2 = vector.load %arg3[%c0_3, %c0_4] : memref<16x128xf32, #tpu.memory_space<vmem>>, vector<16x128xf32>
    %c0_5 = arith.constant 0 : index
    %c0_6 = arith.constant 0 : index
    %3 = vector.load %arg4[%c0_5, %c0_6] : memref<4x128xf32, #tpu.memory_space<vmem>>, vector<4x128xf32>
    %4 = arith.mulf %1, %0 : vector<16x32xf32>
    %cst = arith.constant dense<0.000000e+00> : vector<16xf32>
    %5 = vector.multi_reduction <add>, %4, %cst [1] : vector<16x32xf32> to vector<16xf32>
    %6 = vector.shape_cast %5 : vector<16xf32> to vector<16x1xf32>
    %cst_7 = arith.constant 0.000000e+00 : f32
    %7 = vector.broadcast %cst_7 : f32 to vector<16x1xf32>
    %8 = arith.minimumf %6, %7 : vector<16x1xf32>
    %9 = math.absf %6 : vector<16x1xf32>
    %cst_8 = arith.constant 0.000000e+00 : f32
    %10 = vector.broadcast %cst_8 : f32 to vector<16x1xf32>
    %11 = arith.subf %10, %9 : vector<16x1xf32>
    %12 = math.exp %11 : vector<16x1xf32>
    %13 = math.log1p %12 : vector<16x1xf32>
    %14 = arith.subf %8, %13 : vector<16x1xf32>
    %15 = tpu.concatenate %0, %0, %0, %0 in 1 : vector<16x32xf32>, vector<16x32xf32>, vector<16x32xf32>, vector<16x32xf32> -> vector<16x128xf32>
    %16 = arith.mulf %2, %15 : vector<16x128xf32>
    %cst_9 = arith.constant dense<0.000000e+00> : vector<16x4xf32>
    %17 = tpu.matmul %16, %3, %cst_9 {dimension_numbers = #tpu.dot_dimension_numbers<[1], [1], [0], [0], [0, 0, 1, 0], [], []>} : vector<16x128xf32>, vector<4x128xf32>, vector<16x4xf32> -> vector<16x4xf32>
    %cst_10 = arith.constant 0.000000e+00 : f32
    %18 = vector.broadcast %cst_10 : f32 to vector<16x4xf32>
    %19 = arith.subf %18, %17 : vector<16x4xf32>
    %cst_11 = arith.constant 0.000000e+00 : f32
    %20 = vector.broadcast %cst_11 : f32 to vector<16x4xf32>
    %21 = arith.minimumf %19, %20 : vector<16x4xf32>
    %22 = math.absf %19 : vector<16x4xf32>
    %cst_12 = arith.constant 0.000000e+00 : f32
    %23 = vector.broadcast %cst_12 : f32 to vector<16x4xf32>
    %24 = arith.subf %23, %22 : vector<16x4xf32>
    %25 = math.exp %24 : vector<16x4xf32>
    %26 = math.log1p %25 : vector<16x4xf32>
    %27 = arith.subf %21, %26 : vector<16x4xf32>
    %cst_13 = arith.constant dense<0.000000e+00> : vector<16xf32>
    %28 = vector.multi_reduction <add>, %27, %cst_13 [1] : vector<16x4xf32> to vector<16xf32>
    %29 = vector.shape_cast %28 : vector<16xf32> to vector<16x1xf32>
    %30 = arith.addf %14, %29 : vector<16x1xf32>
    %31 = vector.shape_cast %30 : vector<16x1xf32> to vector<1x16x1xf32>
    %cst_14 = arith.constant dense<0.000000e+00> : vector<1xf32>
    %32 = vector.multi_reduction <add>, %31, %cst_14 [1, 2] : vector<1x16x1xf32> to vector<1xf32>
    %33 = vector.shape_cast %32 : vector<1xf32> to vector<1x1x1xf32>
    %34 = vector.extract %33[0, 0, 0] : f32 from vector<1x1x1xf32>
    %35 = vector.broadcast %34 : f32 to vector<1x1x128xf32>
    %c0_15 = arith.constant 0 : index
    %c0_16 = arith.constant 0 : index
    %c0_17 = arith.constant 0 : index
    %36 = vector.load %arg5[%c0_15, %c0_16, %c0_17] : memref<1x1x128xf32, #tpu.memory_space<vmem>>, vector<1x1x128xf32>
    tpu.vector_store %arg5[%c0_15, %c0_16, %c0_17], %35 {strides = array<i32>} : memref<1x1x128xf32, #tpu.memory_space<vmem>>, vector<1x1x128xf32>,
    return
  }
  func.func @transform_0(%arg0: i32) -> (i32, i32) {
    %c0_i32 = arith.constant 0 : i32
    %c0_i32_0 = arith.constant 0 : i32
    return %arg0, %c0_i32 : i32, i32
  }
  func.func @transform_1(%arg0: i32) -> (i32, i32) {
    %c0_i32 = arith.constant 0 : i32
    %c0_i32_0 = arith.constant 0 : i32
    return %arg0, %c0_i32 : i32, i32
  }
  func.func @transform_2(%arg0: i32) -> (i32, i32) {
    %c0_i32 = arith.constant 0 : i32
    %c0_i32_0 = arith.constant 0 : i32
    return %arg0, %c0_i32 : i32, i32
  }
  func.func @transform_3(%arg0: i32) -> (i32, i32) {
    %c0_i32 = arith.constant 0 : i32
    %c0_i32_0 = arith.constant 0 : i32
    %c0_i32_1 = arith.constant 0 : i32
    return %c0_i32, %c0_i32_0 : i32, i32
  }
  func.func @transform_4(%arg0: i32) -> (i32, i32, i32) {
    %c0_i32 = arith.constant 0 : i32
    %c0_i32_0 = arith.constant 0 : i32
    %c0_i32_1 = arith.constant 0 : i32
    return %arg0, %c0_i32, %c0_i32_0 : i32, i32, i32
  }
}

</mosaic_0001>

<bundles_post_ra>
// kernel: tpu_custom_call.1
= control target key start
LH: loop header
LB: loop body
LE: loop exit
PB: predicated region body
PF: predicated region fallthrough
CT: control target
= control target key end

     0   :  { %9 = vsyncpa [#allocation3], 0  ;;  %s452_s0 = inlined_call_operand.hbm [shape: f32[16,32], index: 0, kind: input, shape index: {}]   ;;  %s453_s1 = inlined_call_operand.hbm [shape: f32[16,32], index: 1, kind: input, shape index: {}]   ;;  %s454_s2 = inlined_call_operand.hbm [shape: f32[16,128], index: 2, kind: input, shape index: {}]   ;;  %s455_s3 = inlined_call_operand.vmem [shape: f32[4,128], index: 3, kind: input, shape index: {}]   ;;  %s456_s4 = inlined_call_operand.hbm [shape: f32[1,1,128], index: 4, kind: output, shape index: {}]  }
   0x1   :  { %10 = vsyncpa [#allocation6], 0 }
   0x2   :  { %11 = vsyncpa [#allocation4], 0  ;;  %s403_s15 = smov [#allocation5]   ;;  %s404_s17 = smov [#allocation2]  }
   0x3   :  { %s29_s16 = sshll.u32 %s403_s15, 4  ;;  %s17_s18 = sshll.u32 %s404_s17, 4  ;;  %s30_s16 = int_to_ptr.vmem [resolvable:$true] %s29_s16  ;;  %s18_s18 = int_to_ptr.vmem [resolvable:$true] %s17_s18 }
   0x4   :  { %s325_s19 = scalar_lea.vmem %s30_s16, 256  ;;  %p330_p1 = scmp.lt.s32.totalorder %s30_s16, %s30_s16 }
   0x5   :  { %p326_p0 = scmp.ne.s32.totalorder %s30_s16, %s325_s19  ;;  %p331_p2 = scmp.lt.s32.totalorder %s325_s19, %s325_s19 }
   0x7   :  { %p332_p3 = por %p331_p2, %p330_p1 }
   0x9   :  { %p333_p4 = pnand %p332_p3, %p326_p0 }
   0xb   :  { %336 = shalt.err (!%p333_p4)
}
   0xc   :  { %s405_s20 = smov 128   ;;  %s406_s21 = smov 8  }
   0xd   :  { %35 = dma.hbm_to_vmem [thread:$0]  %s453_s1, 256, %s30_s16, [#allocation6], %s405_s20, %s405_s20, %s406_s21  }
   0xe   :  { %s345_s24 = scalar_lea.vmem %s18_s18, 256  ;;  %p350_p6 = scmp.lt.s32.totalorder %s18_s18, %s18_s18 }
   0xf   :  { %p346_p5 = scmp.ne.s32.totalorder %s18_s18, %s345_s24  ;;  %p351_p7 = scmp.lt.s32.totalorder %s345_s24, %s345_s24 }
  0x11   :  { %p352_p8 = por %p351_p7, %p350_p6 }
  0x13   :  { %p353_p9 = pnand %p352_p8, %p346_p5 }
  0x15   :  { %356 = shalt.err (!%p353_p9)
}
  0x16   :  { %23 = dma.hbm_to_vmem [thread:$0]  %s452_s0, 256, %s18_s18, [#allocation3], %s405_s20, %s405_s20, %s406_s21  }
  0x17   :  { %s407_s27 = smov [#allocation7]  }
  0x18   :  { %s41_s28 = sshll.u32 %s407_s27, 4  ;;  %s42_s28 = int_to_ptr.vmem [resolvable:$true] %s41_s28 }
  0x19   :  { %s365_s29 = scalar_lea.vmem %s42_s28, 256  ;;  %p370_p11 = scmp.lt.s32.totalorder %s42_s28, %s42_s28 }
  0x1a   :  { %p366_p10 = scmp.ne.s32.totalorder %s42_s28, %s365_s29  ;;  %p371_p12 = scmp.lt.s32.totalorder %s365_s29, %s365_s29 }
  0x1c   :  { %p372_p13 = por %p371_p12, %p370_p11 }
  0x1e   :  { %p373_p0 = pnand %p372_p13, %p366_p10 }
  0x20   :  { %376 = shalt.err (!%p373_p0)
}
  0x21   :  { %47 = dma.hbm_to_vmem [thread:$0]  %s454_s2, 256, %s42_s28, [#allocation6], %s405_s20, %s405_s20, %s406_s21  }
  0x22   :  { %397 = dma.done.wait [#allocation3], 256  }
  0x23   :  { %398 = vsyncadd [#allocation3], 4294967040 }
  0x24   :  { %399 = dma.done.wait [#allocation6], 512  }
  0x25   :  { %400 = vsyncadd [#allocation6], 4294966784  ;;  %v59_v0 = vld [vmem:[#allocation2] sm:$0xff]  ;;  %s408_s0 = smov 64   ;;  %s409_s5 = smov 32   ;;  %v60_v2 = vld [vmem:[#allocation2 + $0x8] sm:$0xff] }
  0x26   :  { %113 = vrot.lane.b32.xlu1 %v59_v0, %s408_s0  ;;  %107 = vrot.lane.b32.xlu0 %v59_v0, %s409_s5  ;;  %v65_v1 = vld [vmem:[%s455_s3] sm:$0xf]  ;;  %s410_s8 = smov 96   ;;  %v61_v3 = vld [vmem:[#allocation5] sm:$0xff]  ;;  %v62_v5 = vld [vmem:[#allocation5 + $0x8] sm:$0xff]  ;;  %vm68_vm0 = vcmask 261120  }
  0x27   :  { %285 = vmatprep.subr.mxu0 %v65_v1  ;;  %v66_v4 = vmul.f32 %v61_v3, %v59_v0  ;;  %v67_v7 = vmul.f32 %v62_v5, %v60_v2  ;;  %vm127_vm1 = vcmask 523264   ;;  %vm130_vm2 = vcmask 785408   ;;  %v64_v15 = vld [vmem:[#allocation7 + $0x8] sm:$0xff]  ;;  %v63_v16 = vld [vmem:[#allocation7] sm:$0xff]  ;;  %s411_s2 = smov [#allocation8]  }
  0x28   :  { %286 = vmatpush3.xpose.msra.mxu0 %v65_v1  ;;  %vm242_vm5 = vcmask 31744   ;;  %vm251_vm8 = vcmask 7168   ;;  %s272_s3 = sshll.u32 %s411_s2, 4  ;;  %s273_s3 = int_to_ptr.vmem [resolvable:$true] %s272_s3 }
  0x29   :  { %v69_v6 = vsel %vm68_vm0, %v66_v4, 0.0  ;;  %v72_v8 = vsel %vm68_vm0, %v67_v7, 0.0  ;;  %s377_s10 = scalar_lea.vmem %s273_s3, 16  ;;  %s381_s11 = scalar_lea.vmem %s273_s3, 32 }
  0x2a   :  { %115 = vrot.lane.b32.xlu1 %v60_v2, %s408_s0  ;;  %109 = vrot.lane.b32.xlu0 %v60_v2, %s409_s5  ;;  %p378_p1 = scmp.ne.s32.totalorder %s273_s3, %s377_s10  ;;  %p382_p2 = scmp.lt.s32.totalorder %s273_s3, %s273_s3 }
  0x2b   :  { %p383_p3 = scmp.lt.s32.totalorder %s381_s11, %s377_s10 }
  0x2d   :  { %p384_p4 = por %p383_p3, %p382_p2 }
  0x2e   :  { %121 = vrot.lane.b32.xlu1 %v60_v2, %s410_s8  ;;  %119 = vrot.lane.b32.xlu0 %v59_v0, %s410_s8 }
  0x2f   :  { %p385_p5 = pnand %p384_p4, %p378_p1 }
  0x4d   :  { %70 = vadd.xlane.f32.xlu0 %v69_v6 }
  0x52   :  { %73 = vadd.xlane.f32.xlu1 %v72_v8 }
  0x98   :  { %v114_v9 = vpop.permute.xlu1 %113  ;;  %v108_v10 = vpop.permute.xlu0 %107 }
  0x99   :  { %v125_v13 = vsel %vm68_vm0, %v59_v0, %v108_v10 }
  0x9a   :  { %v128_v20 = vsel %vm127_vm1, %v125_v13, %v114_v9 }
  0x9c   :  { %v116_v11 = vpop.permute.xlu1 %115  ;;  %v110_v12 = vpop.permute.xlu0 %109 }
  0x9d   :  { %v126_v14 = vsel %vm68_vm0, %v60_v2, %v110_v12 }
  0x9e   :  { %v129_v18 = vsel %vm127_vm1, %v126_v14, %v116_v11 }
  0xa0   :  { %v122_v17 = vpop.permute.xlu1 %121  ;;  %v120_v19 = vpop.permute.xlu0 %119 }
  0xa1   :  { %v132_v21 = vsel %vm130_vm2, %v129_v18, %v122_v17  ;;  %v131_v22 = vsel %vm130_vm2, %v128_v20, %v120_v19 }
  0xa2   :  { %v134_v23 = vmul.f32 %v132_v21, %v64_v15  ;;  %v133_v24 = vmul.f32 %v131_v22, %v63_v16 }
  0xa4   :  { %287 = vmatprep.mubr.f32.mxu0 %v133_v24 }
  0xa5   :  { %288 = vmatmul.mubr.f32.vlgmr.msra.gmra.mxu0 %v134_v23 }
  0xd6   :  { %v71_v59 = vpop.xlane.xlu0 %70 }
  0xd7   :  { %v77_v61 = vand.u32 2147483647, %v71_v59  ;;  %v75_v19 = vmin.f32 %v71_v59, 0.0 }
  0xd9   :  { %v79_v63 = vsub.f32 0.0, %v77_v61 }
  0xdb   :  { %v74_v60 = vpop.xlane.xlu1 %73  ;;  %v81_v1 = vmul.f32 1.442695, %v79_v63 }
  0xdc   :  { %v78_v62 = vand.u32 2147483647, %v74_v60  ;;  %v76_v21 = vmin.f32 %v74_v60, 0.0 }
  0xde   :  { %v80_v0 = vsub.f32 0.0, %v78_v62 }
  0xe0   :  { %v83_v2 = vmul.f32 1.442695, %v80_v0 }
 0x165   :  { %v289_v25 = vpop.f32.mrf.mxu0 }
 0x166   :  { %v211_v26 = vsub.f32 0.0, %v289_v25 }
 0x167   :  { %v201_v27 = vpop.f32.mrf.mxu0 }
 0x168   :  { %v215_v28 = vand.u32 2147483647, %v211_v26  ;;  %v210_v29 = vsub.f32 0.0, %v201_v27  ;;  %v213_v54 = vmin.f32 %v211_v26, 0.0 }
 0x16a   :  { %v217_v30 = vsub.f32 0.0, %v215_v28  ;;  %v214_v31 = vand.u32 2147483647, %v210_v29  ;;  %v212_v51 = vmin.f32 %v210_v29, 0.0 }
 0x16c   :  { %v220_v32 = vmul.f32 1.442695, %v217_v30  ;;  %v216_v33 = vsub.f32 0.0, %v214_v31 }
 0x16e   :  { %301 = vpow2.f32 %v220_v32  ;;  %v218_v34 = vmul.f32 1.442695, %v216_v33 }
 0x170   :  { %303 = vpow2.f32 %v218_v34 }
 0x17b   :  { %v302_v35 = vpop.eup %301 }
 0x17c   :  { %v231_v36 = vadd.f32 1.0, %v302_v35  ;;  %v234_v40 = vmul.f32 -0.5, %v302_v35  ;;  %v237_v45 = vand.u32 2147483647, %v302_v35 }
 0x17d   :  { %v304_v37 = vpop.eup %303 }
 0x17e   :  { %v222_v38 = vadd.f32 1.0, %v304_v37  ;;  %305 = vlog2.f32 %v231_v36  ;;  %v225_v39 = vmul.f32 -0.5, %v304_v37  ;;  %v235_v42 = vadd.f32 1.0, %v234_v40 }
 0x17f   :  { %v228_v44 = vand.u32 2147483647, %v304_v37  ;;  %vm238_vm4 = vcmp.lt.f32.partialorder %v237_v45, 0.0004427343 }
 0x180   :  { %307 = vlog2.f32 %v222_v38  ;;  %v226_v41 = vadd.f32 1.0, %v225_v39  ;;  %v236_v50 = vmul.f32 %v302_v35, %v235_v42 }
 0x181   :  { %vm229_vm3 = vcmp.lt.f32.partialorder %v228_v44, 0.0004427343  ;;  %309 = vpow2.f32 %v81_v1 }
 0x182   :  { %v227_v49 = vmul.f32 %v304_v37, %v226_v41  ;;  %311 = vpow2.f32 %v83_v2 }
 0x18b   :  { %v306_v43 = vpop.eup %305 }
 0x18c   :  { %v233_v46 = vmul.f32 0.6931472, %v306_v43 }
 0x18d   :  { %v308_v47 = vpop.eup %307 }
 0x18e   :  { %v224_v48 = vmul.f32 0.6931472, %v308_v47  ;;  %v239_v53 = vsel %vm238_vm4, %v236_v50, %v233_v46  ;;  %v310_v3 = vpop.eup %309 }
 0x18f   :  { %v241_v57 = vsub.f32 %v213_v54, %v239_v53  ;;  %v312_v4 = vpop.eup %311  ;;  %v85_v5 = vadd.f32 1.0, %v310_v3  ;;  %v88_v7 = vmul.f32 -0.5, %v310_v3  ;;  %v91_v11 = vand.u32 2147483647, %v310_v3 }
 0x190   :  { %v230_v52 = vsel %vm229_vm3, %v227_v49, %v224_v48  ;;  %v94_v6 = vadd.f32 1.0, %v312_v4  ;;  %v97_v8 = vmul.f32 -0.5, %v312_v4  ;;  %v100_v14 = vand.u32 2147483647, %v312_v4 }
 0x191   :  { %v240_v55 = vsub.f32 %v212_v51, %v230_v52  ;;  %v246_v58 = vsel %vm242_vm5, %v241_v57, 0.0  ;;  %313 = vlog2.f32 %v85_v5  ;;  %v89_v9 = vadd.f32 1.0, %v88_v7 }
 0x192   :  { %315 = vlog2.f32 %v94_v6  ;;  %v98_v12 = vadd.f32 1.0, %v97_v8  ;;  %vm92_vm6 = vcmp.lt.f32.partialorder %v91_v11, 0.0004427343  ;;  %vm101_vm7 = vcmp.lt.f32.partialorder %v100_v14, 0.0004427343 }
 0x193   :  { %v243_v56 = vsel %vm242_vm5, %v240_v55, 0.0  ;;  %v90_v16 = vmul.f32 %v310_v3, %v89_v9 }
 0x194   :  { %244 = vadd.xlane.f32.xlu0 %v243_v56  ;;  %v99_v18 = vmul.f32 %v312_v4, %v98_v12 }
 0x198   :  { %247 = vadd.xlane.f32.xlu0 %v246_v58 }
 0x19e   :  { %v314_v10 = vpop.eup %313 }
 0x19f   :  { %v316_v13 = vpop.eup %315  ;;  %v87_v15 = vmul.f32 0.6931472, %v314_v10 }
 0x1a0   :  { %v96_v17 = vmul.f32 0.6931472, %v316_v13 }
 0x1a1   :  { %v93_v20 = vsel %vm92_vm6, %v90_v16, %v87_v15 }
 0x1a2   :  { %v102_v23 = vsel %vm101_vm7, %v99_v18, %v96_v17  ;;  %v103_v24 = vsub.f32 %v75_v19, %v93_v20 }
 0x1a3   :  { %v104_v26 = vsub.f32 %v76_v21, %v102_v23 }
 0x21d   :  { %v245_v22 = vpop.xlane.xlu0 %244 }
 0x21e   :  { %v249_v25 = vadd.f32 %v245_v22, %v103_v24 }
 0x220   :  { %v252_v29 = vsel %vm251_vm8, %v249_v25, 0.0 }
 0x221   :  { %v248_v27 = vpop.xlane.xlu0 %247 }
 0x222   :  { %v250_v28 = vadd.f32 %v248_v27, %v104_v26 }
 0x224   :  { %v253_v30 = vsel %vm251_vm8, %v250_v28, 0.0 }
 0x225   :  { %v254_v31 = vadd.f32 %v253_v30, %v252_v29 }
 0x227   :  { %255 = vadd.xlane.f32.xlu1 %v254_v31 }
 0x2b0   :  { %v256_v32 = vpop.xlane.xlu1 %255 }
 0x2b1   :  { %v257_v33 = vrot.slane %v256_v32, 4 }
 0x2b3   :  { %v258_v34 = vadd.f32 %v257_v33, %v256_v32 }
 0x2b5   :  { %v259_v35 = vrot.slane %v258_v34, 2 }
 0x2b7   :  { %v260_v36 = vadd.f32 %v259_v35, %v258_v34 }
 0x2b9   :  { %v261_v37 = vrot.slane %v260_v36, 1 }
 0x2bb   :  { %v262_v38 = vadd.f32 %v261_v37, %v260_v36 }
 0x2bd   :  { %290 = vpush %v262_v38 }
 0x2ee   :  { %s291_s9 = spop %290 }
 0x2ef   :  { %v264_v39 = vstv %s291_s9 }
 0x2f0   :  { %265 = vst [vmem:[#allocation8] sm:$0x1] %v264_v39 }
 0x2f1   :  { %388 = shalt.err (!%p385_p5)
}
 0x2f2   :  { %275 = dma.vmem_to_hbm [thread:$0]  %s273_s3, 16, %s456_s4, [#allocation4]  }
 0x2f3   :  { %401 = dma.done.wait [#allocation4], 16  }
 0x2f4   :  { %402 = vsyncadd [#allocation4], 4294967280 }
 0x2f5   :  { %279 = vsyncpa [#allocation3], 1 }
 0x2f6   :  { %280 = vsyncpa [#allocation6], 1 }
 0x2f7   :  { %281 = vsyncpa [#allocation4], 1 }

</bundles_post_ra>
